<compile_context>
chip_gen: v5e
topology: v5e:2x2
jax: 0.10.0
libtpu: 0.0.40
codegen_flags: <defaults>
</compile_context>

<pallas_src>
import functools
import math

import jax
import jax.numpy as jnp
from jax import lax
from jax.experimental import pallas as pl
from jax.experimental.pallas import tpu as pltpu

_LANE = 128          # pad all feature/class dims to multiples of this
_NEG_BIG = -1e30     # mask value for padded class columns in log_softmax


def _round_up(x, m):
    return (x + m - 1) // m * m


def _vmem_limit_bytes():
    """Scoped-VMEM limit derived from the chip (v7x has only 64 MiB / TC)."""
    try:
        cap = pltpu.get_tpu_info().vmem_capacity_bytes
    except Exception:
        cap = 64 * 1024 * 1024   # conservative floor (v7x)
    return int(cap * 3 // 4)     # headroom for double-buffered pipelining


def _compiler_params():
    return pltpu.CompilerParams(
        dimension_semantics=("parallel",),   # row-tile axis -> megacore on v7x
        vmem_limit_bytes=_vmem_limit_bytes(),
    )


def _nbytes(*arrs):
    return int(sum(int(a.size) * a.dtype.itemsize for a in arrs))


def _epilogue(out_f32, b_f32, activation, valid_cols):
    """Bias + activation, all in f32.  out_f32: (TM, F_out_pad)."""
    out = out_f32 + b_f32
    if activation == "relu":
        out = jnp.maximum(out, 0.0)
    elif activation == "log_softmax":
        # mask padded class columns so they don't pollute the softmax
        col = lax.broadcasted_iota(jnp.int32, out.shape, 1)
        out = jnp.where(col < valid_cols, out, _NEG_BIG)
        m = jnp.max(out, axis=1, keepdims=True)
        shifted = out - m
        lse = jnp.log(jnp.sum(jnp.exp(shifted), axis=1, keepdims=True))
        out = shifted - lse
    return out


# ---------------------------------------------------------------------------
# Kernels
# ---------------------------------------------------------------------------

def _agg_proj_kernel(adj_ref, h_ref, w_ref, b_ref, out_ref, *,
                     activation, valid_cols):
    """out_tile = act((adj_tile @ H) @ W + b).  Used when F_in <= F_out."""
    agg = jnp.dot(adj_ref[...], h_ref[...],
                  preferred_element_type=jnp.float32)           # (TM, F_in)
    out = jnp.dot(agg.astype(w_ref.dtype), w_ref[...],
                  preferred_element_type=jnp.float32)           # (TM, F_out)
    out_ref[...] = _epilogue(out, b_ref[...].astype(jnp.float32),
                             activation, valid_cols).astype(out_ref.dtype)


def _proj_kernel(h_ref, w_ref, out_ref):
    """S_tile = H_tile @ W (projection; bias added after aggregation)."""
    out_ref[...] = jnp.dot(h_ref[...], w_ref[...],
                           preferred_element_type=jnp.float32
                           ).astype(out_ref.dtype)


def _agg_kernel(adj_ref, s_ref, b_ref, out_ref, *, activation, valid_cols):
    """out_tile = act(adj_tile @ S + b).  Used when F_in > F_out."""
    out = jnp.dot(adj_ref[...], s_ref[...],
                  preferred_element_type=jnp.float32)
    out_ref[...] = _epilogue(out, b_ref[...].astype(jnp.float32),
                             activation, valid_cols).astype(out_ref.dtype)


# ---------------------------------------------------------------------------
# Per-layer wrapper
# ---------------------------------------------------------------------------

def _gcn_layer(h, adj, w, b, *, activation, valid_cols, tm):
    """One GraphConvolution (+ activation), node-row tiled.

    h:   (N_pad, F_in_pad)   bf16
    adj: (N_pad, N_pad)      bf16
    w:   (F_in_pad, F_out_pad) bf16
    b:   (1, F_out_pad)      f32
    """
    n_pad = adj.shape[0]
    f_in, f_out = w.shape
    grid = (n_pad // tm,)
    out_dtype = jnp.float32 if activation == "log_softmax" else jnp.bfloat16
    cp = _compiler_params()
    transc = n_pad * f_out if activation == "log_softmax" else 0

    adj_spec = pl.BlockSpec((tm, n_pad), lambda i: (i, 0))
    b_spec = pl.BlockSpec((1, f_out), lambda i: (0, 0))
    out_spec = pl.BlockSpec((tm, f_out), lambda i: (i, 0))
    out_shape = jax.ShapeDtypeStruct((n_pad, f_out), out_dtype)
    out_bytes = n_pad * f_out * jnp.dtype(out_dtype).itemsize

    if f_in <= f_out:
        # Aggregate the narrower F_in first: (adj @ H) @ W
        kernel = functools.partial(_agg_proj_kernel,
                                   activation=activation,
                                   valid_cols=valid_cols)
        return pl.pallas_call(
            kernel,
            out_shape=out_shape,
            grid_spec=pltpu.PrefetchScalarGridSpec(
                num_scalar_prefetch=0,
                grid=grid,
                in_specs=[adj_spec,
                          pl.BlockSpec((n_pad, f_in), lambda i: (0, 0)),
                          pl.BlockSpec((f_in, f_out), lambda i: (0, 0)),
                          b_spec],
                out_specs=out_spec,
            ),
            compiler_params=cp,
            cost_estimate=pl.CostEstimate(
                flops=2 * n_pad * n_pad * f_in + 2 * n_pad * f_in * f_out,
                transcendentals=transc,
                bytes_accessed=_nbytes(adj, h, w, b) + out_bytes),
        )(adj, h, w, b)

    # F_out is narrower: project first (S = H @ W), then aggregate adj @ S.
    s = pl.pallas_call(
        _proj_kernel,
        out_shape=jax.ShapeDtypeStruct((n_pad, f_out), jnp.bfloat16),
        grid_spec=pltpu.PrefetchScalarGridSpec(
            num_scalar_prefetch=0,
            grid=grid,
            in_specs=[pl.BlockSpec((tm, f_in), lambda i: (i, 0)),
                      pl.BlockSpec((f_in, f_out), lambda i: (0, 0))],
            out_specs=pl.BlockSpec((tm, f_out), lambda i: (i, 0)),
        ),
        compiler_params=cp,
        cost_estimate=pl.CostEstimate(
            flops=2 * n_pad * f_in * f_out,
            transcendentals=0,
            bytes_accessed=_nbytes(h, w) + n_pad * f_out * 2),
    )(h, w)

    kernel = functools.partial(_agg_kernel, activation=activation,
                               valid_cols=valid_cols)
    return pl.pallas_call(
        kernel,
        out_shape=out_shape,
        grid_spec=pltpu.PrefetchScalarGridSpec(
            num_scalar_prefetch=0,
            grid=grid,
            in_specs=[adj_spec,
                      pl.BlockSpec((n_pad, f_out), lambda i: (0, 0)),
                      b_spec],
            out_specs=out_spec,
        ),
        compiler_params=cp,
        cost_estimate=pl.CostEstimate(
            flops=2 * n_pad * n_pad * f_out,
            transcendentals=transc,
            bytes_accessed=_nbytes(adj, s, b) + out_bytes),
    )(adj, s, b)


# ---------------------------------------------------------------------------
# Full forward
# ---------------------------------------------------------------------------

def gcn_forward(x, adj, params, *, tm=128):
    """params = [(W1, b1), ..., (W4, b4)], W_i (fin, fout), b_i (1, fout).

    Returns log_softmax(logits) of shape (N, nclass), matching the PyTorch
    module in eval mode (dropout = identity)."""
    n, nfeat = x.shape
    nclass = params[-1][0].shape[1]

    n_pad = _round_up(n, max(tm, _LANE))
    nfeat_pad = _round_up(nfeat, _LANE)

    # Pad + cast operands: bf16 matmul inputs, zero padding (safe end-to-end
    # since padded weight/bias columns/rows are zero; padded class columns are
    # masked in the log_softmax epilogue).
    x_p = jnp.zeros((n_pad, nfeat_pad), jnp.bfloat16)
    x_p = x_p.at[:n, :nfeat].set(x.astype(jnp.bfloat16))
    adj_p = jnp.zeros((n_pad, n_pad), jnp.bfloat16)
    adj_p = adj_p.at[:n, :n].set(adj.astype(jnp.bfloat16))

    padded_params = []
    fin_pad = nfeat_pad
    for w, b in params:
        fin, fout = w.shape
        fout_pad = _round_up(fout, _LANE)
        w_p = jnp.zeros((fin_pad, fout_pad), jnp.bfloat16)
        w_p = w_p.at[:fin, :fout].set(w.astype(jnp.bfloat16))
        b_p = jnp.zeros((1, fout_pad), jnp.float32)
        b_p = b_p.at[:, :fout].set(b.astype(jnp.float32))
        padded_params.append((w_p, b_p))
        fin_pad = fout_pad

    h = x_p
    n_layers = len(padded_params)
    for idx, (w_p, b_p) in enumerate(padded_params):
        last = idx == n_layers - 1
        h = _gcn_layer(
            h, adj_p, w_p, b_p,
            activation="log_softmax" if last else "relu",
            valid_cols=nclass if last else 0,
            tm=tm)
        # dropout (eval mode) -> identity between layers

    return h[:n, :nclass]


def init_gcn_params(key, nfeat, nhid, nclass):
    """Deterministic init mimicking pygcn's reset_parameters:
       uniform(-stdv, stdv) with stdv = 1/sqrt(out_features)."""
    # NOTE: the module hard-codes hidden sizes 600 -> 16 -> 4 (nhid unused).
    dims = [(nfeat, 600), (600, 16), (16, 4), (4, nclass)]
    params = []
    for (fin, fout) in dims:
        key, kw, kb = jax.random.split(key, 3)
        stdv = 1.0 / math.sqrt(fout)
        w = jax.random.uniform(kw, (fin, fout), jnp.float32, -stdv, stdv)
        b = jax.random.uniform(kb, (1, fout), jnp.float32, -stdv, stdv)
        params.append((w, b))
    return params


if __name__ == "__main__":
    key = jax.random.PRNGKey(0)
    k_x, k_adj, k_p = jax.random.split(key, 3)

    N = 32        # nodes
    NFEAT = 64    # input feature dim
    NHID = 16     # (unused by the module's hard-coded hidden sizes)
    NCLASS = 8

    x = jax.random.normal(k_x, (N, NFEAT), jnp.float32)

    # Symmetric row-normalized adjacency (with self loops), dense.
    a = (jax.random.uniform(k_adj, (N, N)) < 0.15).astype(jnp.float32)
    a = jnp.maximum(a, a.T) + jnp.eye(N, dtype=jnp.float32)
    adj = a / jnp.sum(a, axis=1, keepdims=True)

    params = init_gcn_params(k_p, NFEAT, NHID, NCLASS)

    out = jax.block_until_ready(gcn_forward(x, adj, params))

    # Pure-JAX f32 reference of the same forward pass (eval-mode dropout).
    def ref_forward(x, adj, params):
        h = x
        for i, (w, b) in enumerate(params):
            h = adj @ (h @ w) + b
            if i < len(params) - 1:
                h = jnp.maximum(h, 0.0)
        return jax.nn.log_softmax(h, axis=1)

    ref = ref_forward(x, adj, params)
    row_sums = jnp.sum(jnp.exp(out), axis=1)

    assert out.shape == (N, NCLASS)
    assert bool(jnp.all(jnp.abs(row_sums - 1.0) < 1e-3))          # valid log-probs
    assert bool(jnp.max(jnp.abs(out - ref)) < 1e-1)               # bf16 vs f32 ref

    print("KERNEL_OK")
</pallas_src>

<mosaic_0001>
module attributes {stable_mosaic.version = 11 : i64} {
  func.func @_agg_proj_kernel(%arg0: i32, %arg1: memref<128x128xbf16, #tpu.memory_space<vmem>>, %arg2: memref<128x128xbf16, #tpu.memory_space<vmem>>, %arg3: memref<128x640xbf16, #tpu.memory_space<vmem>>, %arg4: memref<1x640xf32, #tpu.memory_space<vmem>>, %arg5: memref<128x640xbf16, #tpu.memory_space<vmem>>) attributes {dimension_semantics = [#tpu.dimension_semantics<parallel>], iteration_bounds = array<i64: 1>, scalar_prefetch = 0 : i64, scratch_operands = 0 : i64, tpu.core_type = #tpu.core_type<tc>, window_params = [{transform_indices = @transform_0, window_bounds = array<i64: 128, 128>}, {pipeline_mode = #tpu.pipeline_mode<synchronous>, transform_indices = @transform_1, window_bounds = array<i64: 128, 128>}, {pipeline_mode = #tpu.pipeline_mode<synchronous>, transform_indices = @transform_2, window_bounds = array<i64: 128, 640>}, {pipeline_mode = #tpu.pipeline_mode<synchronous>, transform_indices = @transform_3, window_bounds = array<i64: 1, 640>}, {transform_indices = @transform_4, window_bounds = array<i64: 128, 640>}]} {
    %c0 = arith.constant 0 : index
    %c0_0 = arith.constant 0 : index
    %0 = vector.load %arg1[%c0, %c0_0] : memref<128x128xbf16, #tpu.memory_space<vmem>>, vector<128x128xbf16>
    %c0_1 = arith.constant 0 : index
    %c0_2 = arith.constant 0 : index
    %1 = vector.load %arg2[%c0_1, %c0_2] : memref<128x128xbf16, #tpu.memory_space<vmem>>, vector<128x128xbf16>
    %cst = arith.constant dense<0.000000e+00> : vector<128x128xf32>
    %2 = tpu.matmul %0, %1, %cst {dimension_numbers = #tpu.dot_dimension_numbers<[1], [0], [0], [1], [0, 0, 1, 1], [], []>} : vector<128x128xbf16>, vector<128x128xbf16>, vector<128x128xf32> -> vector<128x128xf32>
    %3 = arith.truncf %2 : vector<128x128xf32> to vector<128x128xbf16>
    %c0_3 = arith.constant 0 : index
    %c0_4 = arith.constant 0 : index
    %4 = vector.load %arg3[%c0_3, %c0_4] : memref<128x640xbf16, #tpu.memory_space<vmem>>, vector<128x640xbf16>
    %cst_5 = arith.constant dense<0.000000e+00> : vector<128x640xf32>
    %5 = tpu.matmul %3, %4, %cst_5 {dimension_numbers = #tpu.dot_dimension_numbers<[1], [0], [0], [1], [0, 0, 1, 1], [], []>} : vector<128x128xbf16>, vector<128x640xbf16>, vector<128x640xf32> -> vector<128x640xf32>
    %c0_6 = arith.constant 0 : index
    %c0_7 = arith.constant 0 : index
    %6 = vector.load %arg4[%c0_6, %c0_7] : memref<1x640xf32, #tpu.memory_space<vmem>>, vector<1x640xf32>
    %7 = vector.broadcast %6 : vector<1x640xf32> to vector<128x640xf32>
    %8 = arith.addf %5, %7 : vector<128x640xf32>
    %cst_8 = arith.constant 0.000000e+00 : f32
    %9 = vector.broadcast %cst_8 : f32 to vector<128x640xf32>
    %10 = arith.maximumf %8, %9 : vector<128x640xf32>
    %11 = arith.truncf %10 : vector<128x640xf32> to vector<128x640xbf16>
    %c0_9 = arith.constant 0 : index
    %c0_10 = arith.constant 0 : index
    %12 = vector.load %arg5[%c0_9, %c0_10] : memref<128x640xbf16, #tpu.memory_space<vmem>>, vector<128x640xbf16>
    tpu.vector_store %arg5[%c0_9, %c0_10], %11 {strides = array<i32>} : memref<128x640xbf16, #tpu.memory_space<vmem>>, vector<128x640xbf16>,
    return
  }
  func.func @transform_0(%arg0: i32) -> (i32, i32) {
    %c0_i32 = arith.constant 0 : i32
    %c0_i32_0 = arith.constant 0 : i32
    return %arg0, %c0_i32 : i32, i32
  }
  func.func @transform_1(%arg0: i32) -> (i32, i32) {
    %c0_i32 = arith.constant 0 : i32
    %c0_i32_0 = arith.constant 0 : i32
    %c0_i32_1 = arith.constant 0 : i32
    return %c0_i32, %c0_i32_0 : i32, i32
  }
  func.func @transform_2(%arg0: i32) -> (i32, i32) {
    %c0_i32 = arith.constant 0 : i32
    %c0_i32_0 = arith.constant 0 : i32
    %c0_i32_1 = arith.constant 0 : i32
    return %c0_i32, %c0_i32_0 : i32, i32
  }
  func.func @transform_3(%arg0: i32) -> (i32, i32) {
    %c0_i32 = arith.constant 0 : i32
    %c0_i32_0 = arith.constant 0 : i32
    %c0_i32_1 = arith.constant 0 : i32
    return %c0_i32, %c0_i32_0 : i32, i32
  }
  func.func @transform_4(%arg0: i32) -> (i32, i32) {
    %c0_i32 = arith.constant 0 : i32
    %c0_i32_0 = arith.constant 0 : i32
    return %arg0, %c0_i32 : i32, i32
  }
}

</mosaic_0001>

<bundles_post_ra>
// kernel: tpu_custom_call.1
= control target key start
LH: loop header
LB: loop body
LE: loop exit
PB: predicated region body
PF: predicated region fallthrough
CT: control target
= control target key end

     0   :  { %9 = vsyncpa [#allocation3], 0  ;;  %s1621_s0 = inlined_call_operand.hbm [shape: bf16[128,128], index: 0, kind: input, shape index: {}]   ;;  %s1622_s1 = inlined_call_operand.hbm [shape: bf16[128,128], index: 1, kind: input, shape index: {}]   ;;  %s1623_s2 = inlined_call_operand.hbm [shape: bf16[128,640], index: 2, kind: input, shape index: {}]   ;;  %s1624_s3 = inlined_call_operand.hbm [shape: f32[1,640], index: 3, kind: input, shape index: {}]   ;;  %s1625_s4 = inlined_call_operand.hbm [shape: bf16[128,640], index: 4, kind: output, shape index: {}]  }
   0x1   :  { %10 = vsyncpa [#allocation6], 0 }
   0x2   :  { %11 = vsyncpa [#allocation9], 0 }
   0x3   :  { %12 = vsyncpa [#allocation4], 0  ;;  %s30_s17 = sshll.u32 %s1622_s1, 4  ;;  %s1407_s18 = smov [#allocation5]   ;;  %s31_s17 = int_to_ptr.hbm [resolvable:$true] %s30_s17 }
   0x4   :  { %s32_s19 = sshll.u32 %s1407_s18, 4  ;;  %s17_s22 = sshll.u32 %s1621_s0, 4  ;;  %s33_s19 = int_to_ptr.vmem [resolvable:$true] %s32_s19  ;;  %s18_s22 = int_to_ptr.hbm [resolvable:$true] %s17_s22 }
   0x5   :  { %s1408_s23 = smov 64   ;;  %s1409_s24 = smov 4  }
   0x6   :  { %38 = dma.hbm_to_vmem [thread:$0]  %s31_s17, 1024, %s33_s19, [#allocation6], %s1408_s23, %s1408_s23, %s1409_s24  }
   0x7   :  { %s1410_s25 = smov [#allocation2]   ;;  %s43_s29 = sshll.u32 %s1623_s2, 4  ;;  %s44_s29 = int_to_ptr.hbm [resolvable:$true] %s43_s29 }
   0x8   :  { %s19_s26 = sshll.u32 %s1410_s25, 4  ;;  %s1411_s1 = smov [#allocation7]   ;;  %s20_s26 = int_to_ptr.vmem [resolvable:$true] %s19_s26 }
   0x9   :  { %25 = dma.hbm_to_vmem [thread:$0]  %s18_s22, 1024, %s20_s26, [#allocation3], %s1408_s23, %s1408_s23, %s1409_s24  }
   0xa   :  { %s45_s30 = sshll.u32 %s1411_s1, 4  ;;  %s57_s0 = sshll.u32 %s1624_s3, 4  ;;  %s46_s30 = int_to_ptr.vmem [resolvable:$true] %s45_s30  ;;  %s58_s0 = int_to_ptr.hbm [resolvable:$true] %s57_s0 }
   0xb   :  { %s1412_s7 = smov 320   ;;  %s1413_s8 = smov 20  }
   0xc   :  { %51 = dma.hbm_to_vmem [thread:$0]  %s44_s29, 5120, %s46_s30, [#allocation6], %s1412_s7, %s1412_s7, %s1413_s8  }
   0xd   :  { %s1414_s9 = smov [#allocation8]  }
   0xe   :  { %s59_s10 = sshll.u32 %s1414_s9, 4  ;;  %s60_s10 = int_to_ptr.vmem [resolvable:$true] %s59_s10 }
   0xf   :  { %62 = dma.hbm_to_vmem [thread:$0]  %s58_s0, 80, %s60_s10, [#allocation9]  }
  0x10   :  { %1399 = dma.done.wait [#allocation3], 1024  }
  0x11   :  { %1400 = vsyncadd [#allocation3], 4294966272 }
  0x12   :  { %1401 = dma.done.wait [#allocation6], 6144  }
  0x13   :  { %1402 = vsyncadd [#allocation6], 4294961152 }
  0x14   :  { %1403 = dma.done.wait [#allocation9], 80  }
  0x15   :  { %1404 = vsyncadd [#allocation9], 4294967216  ;;  %v1213_v0 = vld [vmem:[#allocation5 + $0x38] sm:$0xff]  ;;  %v1212_v1 = vld [vmem:[#allocation5 + $0x30] sm:$0xff]  ;;  %s1415_s2 = smov [#allocation10]   ;;  %s959_s13 = sshll.u32 %s1625_s4, 4  ;;  %s960_s13 = int_to_ptr.hbm [resolvable:$true] %s959_s13 }
  0x16   :  { %207 = vmatpush.bf16.msra.mxu0 %v1213_v0  ;;  %1254 = vmatpush.bf16.msra.mxu2 %v1213_v0  ;;  %v1211_v2 = vld [vmem:[#allocation5 + $0x28] sm:$0xff]  ;;  %v1210_v3 = vld [vmem:[#allocation5 + $0x20] sm:$0xff]  ;;  %v1209_v4 = vld [vmem:[#allocation5 + $0x18] sm:$0xff]  ;;  %s957_s3 = sshll.u32 %s1415_s2, 4  ;;  %s958_s3 = int_to_ptr.vmem [resolvable:$true] %s957_s3 }
  0x17   :  { %v1208_v5 = vld [vmem:[#allocation5 + $0x10] sm:$0xff]  ;;  %v1207_v6 = vld [vmem:[#allocation5 + $0x8] sm:$0xff]  ;;  %v1206_v7 = vld [vmem:[#allocation5] sm:$0xff] }
  0x18   :  { %v1198_v8 = vld [vmem:[#allocation2] sm:$0xff]  ;;  %v1199_v10 = vld [vmem:[#allocation2 + $0x8] sm:$0xff]  ;;  %v1180_v12 = vld [vmem:[#allocation7 + $0x118] sm:$0xf] }
  0x19   :  { %v1202_v9 = vld [vmem:[#allocation2 + $0x20] sm:$0xff]  ;;  %v1203_v11 = vld [vmem:[#allocation2 + $0x28] sm:$0xff]  ;;  %v1249_v14 = vld [vmem:[#allocation7 + $0x11c] sm:$0xf] }
  0x1a   :  { %208 = vmatpush.bf16.msra.mxu0 %v1212_v1  ;;  %1255 = vmatpush.bf16.msra.mxu2 %v1212_v1  ;;  %v1251_v13 = vld [vmem:[#allocation7 + $0x128] sm:$0xf0]  ;;  %v1182_v16 = vld [vmem:[#allocation7 + $0x12c] sm:$0xf0]  ;;  %v1250_v17 = vld [vmem:[#allocation7 + $0x124] sm:$0xf] }
  0x1b   :  { %v1181_v15 = vor.u32 %v1251_v13, %v1180_v12  ;;  %v1190_v18 = vld [vmem:[#allocation7 + $0x134] sm:$0xf0]  ;;  %v1185_v19 = vor.u32 %v1249_v14, %v1182_v16  ;;  %v1160_v21 = vld [vmem:[#allocation7 + $0xf0] sm:$0xf]  ;;  %v1246_v22 = vld [vmem:[#allocation7 + $0x100] sm:$0xf0] }
  0x1c   :  { %v1193_v20 = vor.u32 %v1250_v17, %v1190_v18  ;;  %v1244_v23 = vld [vmem:[#allocation7 + $0xf4] sm:$0xf]  ;;  %v1161_v24 = vor.u32 %v1246_v22, %v1160_v21  ;;  %v1162_v25 = vld [vmem:[#allocation7 + $0x104] sm:$0xf0]  ;;  %v1245_v26 = vld [vmem:[#allocation7 + $0xfc] sm:$0xf] }
  0x1d   :  { %532 = vmatpush.bf16.msra.mxu1 %v1181_v15  ;;  %v1170_v27 = vld [vmem:[#allocation7 + $0x10c] sm:$0xf0]  ;;  %1262 = vmatpush.bf16.msra.mxu3 %v1181_v15  ;;  %v1165_v28 = vor.u32 %v1244_v23, %v1162_v25  ;;  %v1140_v30 = vld [vmem:[#allocation7 + $0xc8] sm:$0xf]  ;;  %v1241_v31 = vld [vmem:[#allocation7 + $0xd8] sm:$0xf0] }
  0x1e   :  { %209 = vmatpush.bf16.msra.mxu0 %v1211_v2  ;;  %1256 = vmatpush.bf16.msra.mxu2 %v1211_v2  ;;  %v1173_v29 = vor.u32 %v1245_v26, %v1170_v27  ;;  %v1239_v32 = vld [vmem:[#allocation7 + $0xcc] sm:$0xf]  ;;  %v1142_v33 = vld [vmem:[#allocation7 + $0xdc] sm:$0xf0]  ;;  %v1240_v34 = vld [vmem:[#allocation7 + $0xd4] sm:$0xf]  ;;  %v1141_v36 = vor.u32 %v1241_v31, %v1140_v30 }
  0x1f   :  { %v1150_v35 = vld [vmem:[#allocation7 + $0xe4] sm:$0xf0]  ;;  %v1145_v37 = vor.u32 %v1239_v32, %v1142_v33  ;;  %v1120_v39 = vld [vmem:[#allocation7 + $0xa0] sm:$0xf]  ;;  %v1236_v40 = vld [vmem:[#allocation7 + $0xb0] sm:$0xf0] }
  0x20   :  { %v1153_v38 = vor.u32 %v1240_v34, %v1150_v35  ;;  %v1234_v41 = vld [vmem:[#allocation7 + $0xa4] sm:$0xf]  ;;  %v1122_v42 = vld [vmem:[#allocation7 + $0xb4] sm:$0xf0]  ;;  %v1235_v43 = vld [vmem:[#allocation7 + $0xac] sm:$0xf]  ;;  %v1121_v46 = vor.u32 %v1236_v40, %v1120_v39 }
  0x21   :  { %533 = vmatpush.bf16.msra.mxu1 %v1161_v24  ;;  %1263 = vmatpush.bf16.msra.mxu3 %v1161_v24  ;;  %v1130_v44 = vld [vmem:[#allocation7 + $0xbc] sm:$0xf0]  ;;  %v1200_v45 = vld [vmem:[#allocation2 + $0x10] sm:$0xff]  ;;  %v1100_v48 = vld [vmem:[#allocation7 + $0x78] sm:$0xf]  ;;  %v1125_v50 = vor.u32 %v1234_v41, %v1122_v42 }
  0x22   :  { %210 = vmatpush.bf16.msra.mxu0 %v1210_v3  ;;  %1257 = vmatpush.bf16.msra.mxu2 %v1210_v3  ;;  %v1204_v47 = vld [vmem:[#allocation2 + $0x30] sm:$0xff]  ;;  %v1231_v49 = vld [vmem:[#allocation7 + $0x88] sm:$0xf0]  ;;  %v1133_v51 = vor.u32 %v1235_v43, %v1130_v44  ;;  %v1229_v52 = vld [vmem:[#allocation7 + $0x7c] sm:$0xf] }
  0x23   :  { %v1102_v53 = vld [vmem:[#allocation7 + $0x8c] sm:$0xf0]  ;;  %v1230_v54 = vld [vmem:[#allocation7 + $0x84] sm:$0xf]  ;;  %v1110_v55 = vld [vmem:[#allocation7 + $0x94] sm:$0xf0]  ;;  %v1101_v56 = vor.u32 %v1231_v49, %v1100_v48 }
  0x24   :  { %v1105_v57 = vor.u32 %v1229_v52, %v1102_v53  ;;  %v1113_v58 = vor.u32 %v1230_v54, %v1110_v55  ;;  %v1201_v59 = vld [vmem:[#allocation2 + $0x18] sm:$0xff]  ;;  %v1080_v61 = vld [vmem:[#allocation7 + $0x50] sm:$0xf]  ;;  %v1226_v62 = vld [vmem:[#allocation7 + $0x60] sm:$0xf0] }
  0x25   :  { %534 = vmatpush.bf16.msra.mxu1 %v1141_v36  ;;  %1264 = vmatpush.bf16.msra.mxu3 %v1141_v36  ;;  %v1205_v60 = vld [vmem:[#allocation2 + $0x38] sm:$0xff]  ;;  %v1224_v63 = vld [vmem:[#allocation7 + $0x54] sm:$0xf]  ;;  %v1081_v0 = vor.u32 %v1226_v62, %v1080_v61  ;;  %v1082_v1 = vld [vmem:[#allocation7 + $0x64] sm:$0xf0] }
  0x26   :  { %211 = vmatpush.bf16.msra.mxu0 %v1209_v4  ;;  %1258 = vmatpush.bf16.msra.mxu2 %v1209_v4  ;;  %v1225_v2 = vld [vmem:[#allocation7 + $0x5c] sm:$0xf]  ;;  %v1090_v3 = vld [vmem:[#allocation7 + $0x6c] sm:$0xf0]  ;;  %v1085_v4 = vor.u32 %v1224_v63, %v1082_v1  ;;  %v1070_v12 = vld [vmem:[#allocation7 + $0x44] sm:$0xf0] }
  0x27   :  { %v1040_v15 = vld [vmem:[#allocation7] sm:$0xf]  ;;  %v1216_v16 = vld [vmem:[#allocation7 + $0x10] sm:$0xf0]  ;;  %v1214_v17 = vld [vmem:[#allocation7 + $0x4] sm:$0xf] }
  0x28   :  { %v1041_v18 = vor.u32 %v1216_v16, %v1040_v15  ;;  %v1050_v21 = vld [vmem:[#allocation7 + $0x1c] sm:$0xf0]  ;;  %v1252_v25 = vld [vmem:[#allocation7 + $0x130] sm:$0xf0]  ;;  %v1196_v27 = vld [vmem:[#allocation7 + $0x128] sm:$0xf] }
  0x29   :  { %535 = vmatpush.bf16.msra.mxu1 %v1121_v46  ;;  %1265 = vmatpush.bf16.msra.mxu3 %v1121_v46  ;;  %v1188_v24 = vld [vmem:[#allocation7 + $0x120] sm:$0xf]  ;;  %v1168_v30 = vld [vmem:[#allocation7 + $0xf8] sm:$0xf]  ;;  %v1247_v31 = vld [vmem:[#allocation7 + $0x108] sm:$0xf0] }
  0x2a   :  { %212 = vmatpush.bf16.msra.mxu0 %v1208_v5  ;;  %1259 = vmatpush.bf16.msra.mxu2 %v1208_v5  ;;  %v1093_v5 = vor.u32 %v1225_v2, %v1090_v3  ;;  %v1189_v26 = vor.u32 %v1252_v25, %v1188_v24  ;;  %v1169_v32 = vor.u32 %v1247_v31, %v1168_v30  ;;  %v1176_v33 = vld [vmem:[#allocation7 + $0x100] sm:$0xf]  ;;  %v1248_v34 = vld [vmem:[#allocation7 + $0x110] sm:$0xf0]  ;;  %v1156_v41 = vld [vmem:[#allocation7 + $0xd8] sm:$0xf] }
  0x2b   :  { %v1177_v36 = vor.u32 %v1248_v34, %v1176_v33  ;;  %v1243_v42 = vld [vmem:[#allocation7 + $0xe8] sm:$0xf0]  ;;  %v1128_v46 = vld [vmem:[#allocation7 + $0xa8] sm:$0xf]  ;;  %v1238_v52 = vld [vmem:[#allocation7 + $0xc0] sm:$0xf0] }
  0x2c   :  { %v1157_v43 = vor.u32 %v1243_v42, %v1156_v41  ;;  %v1108_v55 = vld [vmem:[#allocation7 + $0x80] sm:$0xf]  ;;  %v1227_v1 = vld [vmem:[#allocation7 + $0x68] sm:$0xf0]  ;;  %v1218_v15 = vld [vmem:[#allocation7 + $0x20] sm:$0xf0] }
  0x2d   :  { %536 = vmatpush.bf16.msra.mxu1 %v1101_v56  ;;  %1266 = vmatpush.bf16.msra.mxu3 %v1101_v56  ;;  %v1232_v56 = vld [vmem:[#allocation7 + $0x90] sm:$0xf0] }
  0x2e   :  { %213 = vmatpush.bf16.msra.mxu0 %v1207_v6  ;;  %1260 = vmatpush.bf16.msra.mxu2 %v1207_v6  ;;  %v1060_v6 = vld [vmem:[#allocation7 + $0x28] sm:$0xf] }
  0x31   :  { %537 = vmatpush.bf16.msra.mxu1 %v1081_v0  ;;  %1267 = vmatpush.bf16.msra.mxu3 %v1081_v0  ;;  %v1088_v0 = vld [vmem:[#allocation7 + $0x58] sm:$0xf] }
  0x32   :  { %214 = vmatpush.bf16.msra.mxu0 %v1206_v7  ;;  %1261 = vmatpush.bf16.msra.mxu2 %v1206_v7  ;;  %v1221_v7 = vld [vmem:[#allocation7 + $0x38] sm:$0xf0]  ;;  %v1089_v2 = vor.u32 %v1227_v1, %v1088_v0 }
  0x35   :  { %215 = vmatmul.bf16.vlgmr.msra.gmra.mxu0 %v1198_v8  ;;  %235 = vmatmul.bf16.vlgmr.msra.gmra.mxu2 %v1202_v9  ;;  %v1219_v8 = vld [vmem:[#allocation7 + $0x2c] sm:$0xf]  ;;  %v1061_v9 = vor.u32 %v1221_v7, %v1060_v6 }
  0x36   :  { %581 = vmatpush.bf16.msrb.mxu2 %v1185_v19  ;;  %679 = vmatpush.bf16.msrb.mxu0 %v1193_v20  ;;  %v1042_v19 = vld [vmem:[#allocation7 + $0x14] sm:$0xf0]  ;;  %v1215_v20 = vld [vmem:[#allocation7 + $0xc] sm:$0xf] }
  0x37   :  { %538 = vmatpush.bf16.msra.mxu1 %v1061_v9  ;;  %1268 = vmatpush.bf16.msra.mxu3 %v1061_v9  ;;  %v1045_v22 = vor.u32 %v1214_v17, %v1042_v19  ;;  %v1053_v23 = vor.u32 %v1215_v20, %v1050_v21  ;;  %v1068_v9 = vld [vmem:[#allocation7 + $0x30] sm:$0xf]  ;;  %v1048_v17 = vld [vmem:[#allocation7 + $0x8] sm:$0xf] }
  0x3a   :  { %582 = vmatpush.bf16.msrb.mxu2 %v1165_v28  ;;  %680 = vmatpush.bf16.msrb.mxu0 %v1173_v29  ;;  %v1253_v28 = vld [vmem:[#allocation7 + $0x138] sm:$0xf0] }
  0x3b   :  { %539 = vmatpush.bf16.msra.mxu1 %v1041_v18  ;;  %1269 = vmatpush.bf16.msra.mxu3 %v1041_v18  ;;  %v1197_v29 = vor.u32 %v1253_v28, %v1196_v27  ;;  %v1217_v18 = vld [vmem:[#allocation7 + $0x18] sm:$0xf0] }
  0x3c   :  { %v1049_v19 = vor.u32 %v1217_v18, %v1048_v17 }
  0x3e   :  { %583 = vmatpush.bf16.msrb.mxu2 %v1145_v37  ;;  %681 = vmatpush.bf16.msrb.mxu0 %v1153_v38  ;;  %v1148_v37 = vld [vmem:[#allocation7 + $0xd0] sm:$0xf]  ;;  %v1242_v38 = vld [vmem:[#allocation7 + $0xe0] sm:$0xf0] }
  0x3f   :  { %630 = vmatpush.bf16.msrb.mxu3 %v1189_v26  ;;  %728 = vmatpush.bf16.msrb.mxu1 %v1197_v29  ;;  %v1149_v39 = vor.u32 %v1242_v38, %v1148_v37 }
  0x42   :  { %584 = vmatpush.bf16.msrb.mxu2 %v1125_v50  ;;  %682 = vmatpush.bf16.msrb.mxu0 %v1133_v51  ;;  %v1136_v51 = vld [vmem:[#allocation7 + $0xb0] sm:$0xf] }
  0x43   :  { %631 = vmatpush.bf16.msrb.mxu3 %v1169_v32  ;;  %729 = vmatpush.bf16.msrb.mxu1 %v1177_v36  ;;  %v1137_v54 = vor.u32 %v1238_v52, %v1136_v51  ;;  %v1483_v32 = vld [vmem:[#allocation8] sm:$0x1f] }
  0x44   :  { %v1486_v34 = vperm.slane %v1483_v32, 0 }
  0x45   :  { %220 = vmatmul.bf16.gmra.mxu0 %v1199_v10  ;;  %240 = vmatmul.bf16.gmra.mxu2 %v1203_v11  ;;  %v1062_v10 = vld [vmem:[#allocation7 + $0x3c] sm:$0xf0]  ;;  %v1220_v11 = vld [vmem:[#allocation7 + $0x34] sm:$0xf] }
  0x46   :  { %585 = vmatpush.bf16.msrb.mxu2 %v1105_v57  ;;  %683 = vmatpush.bf16.msrb.mxu0 %v1113_v58  ;;  %v1065_v13 = vor.u32 %v1219_v8, %v1062_v10  ;;  %v1073_v14 = vor.u32 %v1220_v11, %v1070_v12  ;;  %v1109_v57 = vor.u32 %v1232_v56, %v1108_v55  ;;  %v1222_v10 = vld [vmem:[#allocation7 + $0x40] sm:$0xf0]  ;;  %v1076_v11 = vld [vmem:[#allocation7 + $0x38] sm:$0xf] }
  0x47   :  { %632 = vmatpush.bf16.msrb.mxu3 %v1149_v39  ;;  %730 = vmatpush.bf16.msrb.mxu1 %v1157_v43  ;;  %v1069_v12 = vor.u32 %v1222_v10, %v1068_v9 }
  0x4a   :  { %586 = vmatpush.bf16.msrb.mxu2 %v1085_v4  ;;  %684 = vmatpush.bf16.msrb.mxu0 %v1093_v5  ;;  %v1096_v4 = vld [vmem:[#allocation7 + $0x60] sm:$0xf]  ;;  %v1228_v5 = vld [vmem:[#allocation7 + $0x70] sm:$0xf0] }
  0x4b   :  { %731 = vmatpush.bf16.msrb.mxu1 %v1137_v54  ;;  %v1097_v7 = vor.u32 %v1228_v5, %v1096_v4 }
  0x4e   :  { %587 = vmatpush.bf16.msrb.mxu2 %v1065_v13  ;;  %685 = vmatpush.bf16.msrb.mxu0 %v1073_v14  ;;  %v1223_v13 = vld [vmem:[#allocation7 + $0x48] sm:$0xf0]  ;;  %v1056_v14 = vld [vmem:[#allocation7 + $0x10] sm:$0xf] }
  0x4f   :  { %v1077_v16 = vor.u32 %v1223_v13, %v1076_v11  ;;  %v1057_v20 = vor.u32 %v1218_v15, %v1056_v14 }
  0x52   :  { %588 = vmatpush.bf16.msrb.mxu2 %v1045_v22  ;;  %686 = vmatpush.bf16.msrb.mxu0 %v1053_v23 }
  0x55   :  { %225 = vmatmul.bf16.gmra.mxu0 %v1200_v45  ;;  %245 = vmatmul.bf16.gmra.mxu2 %v1204_v47  ;;  %v1237_v47 = vld [vmem:[#allocation7 + $0xb8] sm:$0xf0] }
  0x56   :  { %v1129_v48 = vor.u32 %v1237_v47, %v1128_v46 }
  0x58   :  { %633 = vmatpush.bf16.msrb.mxu3 %v1129_v48 }
  0x5c   :  { %634 = vmatpush.bf16.msrb.mxu3 %v1109_v57 }
  0x60   :  { %635 = vmatpush.bf16.msrb.mxu3 %v1089_v2 }
  0x64   :  { %636 = vmatpush.bf16.msrb.mxu3 %v1069_v12 }
  0x65   :  { %230 = vmatmul.bf16.gmra.mxu0 %v1201_v59  ;;  %250 = vmatmul.bf16.gmra.mxu2 %v1205_v60  ;;  %v1116_v59 = vld [vmem:[#allocation7 + $0x88] sm:$0xf]  ;;  %v1233_v60 = vld [vmem:[#allocation7 + $0x98] sm:$0xf0] }
  0x66   :  { %v1117_v61 = vor.u32 %v1233_v60, %v1116_v59 }
  0x68   :  { %732 = vmatpush.bf16.msrb.mxu1 %v1117_v61  ;;  %637 = vmatpush.bf16.msrb.mxu3 %v1049_v19 }
  0x6c   :  { %733 = vmatpush.bf16.msrb.mxu1 %v1097_v7 }
  0x70   :  { %734 = vmatpush.bf16.msrb.mxu1 %v1077_v16 }
  0x74   :  { %735 = vmatpush.bf16.msrb.mxu1 %v1057_v20 }
  0xb2   :  { %v216_v35 = vpop.f32.mrf.mxu0 }
  0xb8   :  { %v236_v40 = vpop.f32.mrf.mxu2 }
  0xba   :  { %v218_v44 = vpop.f32.mrf.mxu0 }
  0xbb   :  { %v1456_v45 = vpack.c.bf16 %v218_v44, %v216_v35  ;;  %v1490_v35 = vperm.slane %v1483_v32, 1 }
  0xbd   :  { %540 = vmatmul.bf16.vlgmr.msra.gmra.mxu1 %v1456_v45  ;;  %589 = vmatmul.bf16.vlgmr.msrb.gmra.mxu2 %v1456_v45 }
  0xbe   :  { %687 = vmatmul.bf16.vlgmr.msrb.gmra.mxu0 %v1456_v45 }
  0xc0   :  { %v238_v49 = vpop.f32.mrf.mxu2 }
  0xc1   :  { %v1461_v50 = vpack.c.bf16 %v238_v49, %v236_v40 }
  0xc2   :  { %v221_v53 = vpop.f32.mrf.mxu0 }
  0xc3   :  { %560 = vmatmul.bf16.vlgmr.msra.gmra.mxu3 %v1461_v50 }
  0xc8   :  { %v241_v58 = vpop.f32.mrf.mxu2 }
  0xca   :  { %v223_v62 = vpop.f32.mrf.mxu0 }
  0xcb   :  { %v257_v63 = vpack.c.bf16 %v223_v62, %v221_v53 }
  0xcd   :  { %545 = vmatmul.bf16.gmra.mxu1 %v257_v63  ;;  %594 = vmatmul.bf16.gmra.mxu2 %v257_v63 }
  0xce   :  { %692 = vmatmul.bf16.gmra.mxu0 %v257_v63 }
  0xd0   :  { %v243_v3 = vpop.f32.mrf.mxu2 }
  0xd1   :  { %v1464_v6 = vpack.c.bf16 %v243_v3, %v241_v58 }
  0xd2   :  { %v226_v8 = vpop.f32.mrf.mxu0 }
  0xd3   :  { %565 = vmatmul.bf16.gmra.mxu3 %v1464_v6 }
  0xd8   :  { %v246_v21 = vpop.f32.mrf.mxu2 }
  0xda   :  { %v228_v22 = vpop.f32.mrf.mxu0 }
  0xdb   :  { %v258_v23 = vpack.c.bf16 %v228_v22, %v226_v8 }
  0xdd   :  { %550 = vmatmul.bf16.gmra.mxu1 %v258_v23  ;;  %599 = vmatmul.bf16.gmra.mxu2 %v258_v23 }
  0xde   :  { %697 = vmatmul.bf16.gmra.mxu0 %v258_v23 }
  0xe0   :  { %v248_v24 = vpop.f32.mrf.mxu2 }
  0xe1   :  { %v1467_v25 = vpack.c.bf16 %v248_v24, %v246_v21 }
  0xe2   :  { %v231_v26 = vpop.f32.mrf.mxu0 }
  0xe3   :  { %570 = vmatmul.bf16.gmra.mxu3 %v1467_v25 }
  0xe8   :  { %v251_v27 = vpop.f32.mrf.mxu2 }
  0xea   :  { %v233_v28 = vpop.f32.mrf.mxu0 }
  0xeb   :  { %v259_v29 = vpack.c.bf16 %v233_v28, %v231_v26 }
  0xed   :  { %555 = vmatmul.bf16.gmra.mxu1 %v259_v29  ;;  %604 = vmatmul.bf16.gmra.mxu2 %v259_v29 }
  0xee   :  { %702 = vmatmul.bf16.gmra.mxu0 %v259_v29 }
  0xf0   :  { %v253_v30 = vpop.f32.mrf.mxu2 }
  0xf1   :  { %v1470_v31 = vpack.c.bf16 %v253_v30, %v251_v27 }
  0xf3   :  { %575 = vmatmul.bf16.gmra.mxu3 %v1470_v31 }
  0xfd   :  { %609 = vmatmul.bf16.gmra.mxu2 %v1461_v50  ;;  %736 = vmatmul.bf16.vlgmr.msrb.gmra.mxu1 %v1456_v45 }
  0xfe   :  { %707 = vmatmul.bf16.gmra.mxu0 %v1461_v50 }
 0x103   :  { %638 = vmatmul.bf16.vlgmr.msrb.gmra.mxu3 %v1456_v45 }
 0x10d   :  { %614 = vmatmul.bf16.gmra.mxu2 %v1464_v6  ;;  %741 = vmatmul.bf16.gmra.mxu1 %v257_v63 }
 0x10e   :  { %712 = vmatmul.bf16.gmra.mxu0 %v1464_v6 }
 0x113   :  { %643 = vmatmul.bf16.gmra.mxu3 %v257_v63 }
 0x11d   :  { %619 = vmatmul.bf16.gmra.mxu2 %v1467_v25  ;;  %746 = vmatmul.bf16.gmra.mxu1 %v258_v23 }
 0x11e   :  { %717 = vmatmul.bf16.gmra.mxu0 %v1467_v25 }
 0x123   :  { %648 = vmatmul.bf16.gmra.mxu3 %v258_v23 }
 0x12d   :  { %624 = vmatmul.bf16.gmra.mxu2 %v1470_v31  ;;  %751 = vmatmul.bf16.gmra.mxu1 %v259_v29 }
 0x12e   :  { %722 = vmatmul.bf16.gmra.mxu0 %v1470_v31 }
 0x133   :  { %653 = vmatmul.bf16.gmra.mxu3 %v259_v29 }
 0x13a   :  { %v541_v33 = vpop.f32.mrf.mxu1 }
 0x13b   :  { %v542_v36 = vadd.f32 %v541_v33, %v1486_v34  ;;  %v688_v10 = vpop.f32.mrf.mxu0  ;;  %v1529_v33 = vperm.slane %v1483_v32, 4 }
 0x13d   :  { %756 = vmatmul.bf16.gmra.mxu1 %v1461_v50  ;;  %v777_v40 = vmax.f32 %v542_v36, 0.0 }
 0x140   :  { %v590_v37 = vpop.f32.mrf.mxu2 }
 0x141   :  { %v591_v38 = vadd.f32 %v590_v37, %v1490_v35 }
 0x142   :  { %v543_v39 = vpop.f32.mrf.mxu1 }
 0x143   :  { %v778_v41 = vmax.f32 %v591_v38, 0.0  ;;  %658 = vmatmul.bf16.gmra.mxu3 %v1461_v50  ;;  %v544_v44 = vadd.f32 %v543_v39, %v1486_v34  ;;  %v690_v20 = vpop.f32.mrf.mxu0 }
 0x145   :  { %v857_v42 = vpack.c.bf16 %v778_v41, %v777_v40  ;;  %v782_v48 = vmax.f32 %v544_v44, 0.0 }
 0x146   :  { %v1495_v43 = vpop.f32.mrf.mxu3 }
 0x147   :  { %905 = vst [vmem:[#allocation10] sm:$0xff] %v857_v42 }
 0x148   :  { %v592_v45 = vpop.f32.mrf.mxu2 }
 0x149   :  { %v593_v46 = vadd.f32 %v592_v45, %v1490_v35 }
 0x14a   :  { %v546_v47 = vpop.f32.mrf.mxu1 }
 0x14b   :  { %v783_v49 = vmax.f32 %v593_v46, 0.0  ;;  %v547_v50 = vadd.f32 %v546_v47, %v1486_v34  ;;  %v693_v36 = vpop.f32.mrf.mxu0  ;;  %v562_v46 = vadd.f32 %v1495_v43, %v1486_v34 }
 0x14d   :  { %v860_v51 = vpack.c.bf16 %v783_v49, %v782_v48  ;;  %761 = vmatmul.bf16.gmra.mxu1 %v1464_v6  ;;  %v787_v56 = vmax.f32 %v547_v50, 0.0  ;;  %v1538_v49 = vperm.slane %v1483_v32, 3 }
 0x14e   :  { %v1500_v52 = vpop.f32.mrf.mxu3 }
 0x14f   :  { %908 = vst [vmem:[#allocation10 + $0x14] sm:$0xff] %v860_v51  ;;  %v689_v43 = vadd.f32 %v688_v10, %v1538_v49 }
 0x150   :  { %v595_v53 = vpop.f32.mrf.mxu2 }
 0x151   :  { %v596_v54 = vadd.f32 %v595_v53, %v1490_v35 }
 0x152   :  { %v548_v55 = vpop.f32.mrf.mxu1 }
 0x153   :  { %v788_v57 = vmax.f32 %v596_v54, 0.0  ;;  %663 = vmatmul.bf16.gmra.mxu3 %v1464_v6  ;;  %v549_v60 = vadd.f32 %v548_v55, %v1486_v34  ;;  %v1541_v50 = vpop.f32.mrf.mxu0  ;;  %v817_v54 = vmax.f32 %v562_v46, 0.0 }
 0x155   :  { %v863_v58 = vpack.c.bf16 %v788_v57, %v787_v56  ;;  %v792_v0 = vmax.f32 %v549_v60, 0.0  ;;  %v1545_v57 = vperm.slane %v1483_v32, 2 }
 0x156   :  { %v1505_v59 = vpop.f32.mrf.mxu3 }
 0x157   :  { %911 = vst [vmem:[#allocation10 + $0x28] sm:$0xff] %v863_v58 }
 0x158   :  { %v597_v61 = vpop.f32.mrf.mxu2 }
 0x159   :  { %v598_v62 = vadd.f32 %v597_v61, %v1490_v35 }
 0x15a   :  { %v551_v63 = vpop.f32.mrf.mxu1 }
 0x15b   :  { %v793_v1 = vmax.f32 %v598_v62, 0.0  ;;  %v552_v4 = vadd.f32 %v551_v63, %v1486_v34  ;;  %v564_v62 = vadd.f32 %v1500_v52, %v1486_v34  ;;  %v698_v10 = vpop.f32.mrf.mxu0 }
 0x15d   :  { %v866_v2 = vpack.c.bf16 %v793_v1, %v792_v0  ;;  %766 = vmatmul.bf16.gmra.mxu1 %v1467_v25  ;;  %v797_v8 = vmax.f32 %v552_v4, 0.0 }
 0x15e   :  { %v1510_v3 = vpop.f32.mrf.mxu3 }
 0x15f   :  { %914 = vst [vmem:[#allocation10 + $0x3c] sm:$0xff] %v866_v2  ;;  %v780_v2 = vmax.f32 %v689_v43, 0.0 }
 0x160   :  { %v600_v5 = vpop.f32.mrf.mxu2 }
 0x161   :  { %v601_v6 = vadd.f32 %v600_v5, %v1490_v35 }
 0x162   :  { %v553_v7 = vpop.f32.mrf.mxu1 }
 0x163   :  { %v798_v9 = vmax.f32 %v601_v6, 0.0  ;;  %668 = vmatmul.bf16.gmra.mxu3 %v1467_v25  ;;  %v554_v13 = vadd.f32 %v553_v7, %v1486_v34  ;;  %v822_v6 = vmax.f32 %v564_v62, 0.0 }
 0x165   :  { %v869_v11 = vpack.c.bf16 %v798_v9, %v797_v8  ;;  %v802_v17 = vmax.f32 %v554_v13, 0.0 }
 0x166   :  { %v1515_v12 = vpop.f32.mrf.mxu3 }
 0x167   :  { %917 = vst [vmem:[#allocation10 + $0x50] sm:$0xff] %v869_v11  ;;  %v691_v11 = vadd.f32 %v690_v20, %v1538_v49  ;;  %v572_v43 = vadd.f32 %v1515_v12, %v1486_v34 }
 0x168   :  { %v602_v14 = vpop.f32.mrf.mxu2 }
 0x169   :  { %v603_v15 = vadd.f32 %v602_v14, %v1490_v35 }
 0x16a   :  { %v556_v16 = vpop.f32.mrf.mxu1 }
 0x16b   :  { %v803_v18 = vmax.f32 %v603_v15, 0.0  ;;  %v557_v22 = vadd.f32 %v556_v16, %v1486_v34  ;;  %v567_v15 = vadd.f32 %v1505_v59, %v1486_v34 }
 0x16d   :  { %v872_v19 = vpack.c.bf16 %v803_v18, %v802_v17  ;;  %771 = vmatmul.bf16.gmra.mxu1 %v1470_v31  ;;  %v807_v26 = vmax.f32 %v557_v22, 0.0 }
 0x16e   :  { %v1520_v21 = vpop.f32.mrf.mxu3 }
 0x16f   :  { %920 = vst [vmem:[#allocation10 + $0x64] sm:$0xff] %v872_v19  ;;  %v785_v19 = vmax.f32 %v691_v11, 0.0 }
 0x170   :  { %v605_v23 = vpop.f32.mrf.mxu2 }
 0x171   :  { %v606_v24 = vadd.f32 %v605_v23, %v1490_v35 }
 0x172   :  { %v558_v25 = vpop.f32.mrf.mxu1 }
 0x173   :  { %v808_v27 = vmax.f32 %v606_v24, 0.0  ;;  %673 = vmatmul.bf16.gmra.mxu3 %v1470_v31  ;;  %v559_v30 = vadd.f32 %v558_v25, %v1486_v34  ;;  %v827_v25 = vmax.f32 %v567_v15, 0.0 }
 0x175   :  { %v875_v28 = vpack.c.bf16 %v808_v27, %v807_v26  ;;  %v812_v40 = vmax.f32 %v559_v30, 0.0 }
 0x176   :  { %v1525_v29 = vpop.f32.mrf.mxu3 }
 0x177   :  { %923 = vst [vmem:[#allocation10 + $0x78] sm:$0xff] %v875_v28  ;;  %v694_v28 = vadd.f32 %v693_v36, %v1538_v49 }
 0x178   :  { %v607_v37 = vpop.f32.mrf.mxu2 }
 0x179   :  { %v608_v38 = vadd.f32 %v607_v37, %v1490_v35  ;;  %v700_v37 = vpop.f32.mrf.mxu0 }
 0x17a   :  { %v737_v39 = vpop.f32.mrf.mxu1 }
 0x17b   :  { %v813_v41 = vmax.f32 %v608_v38, 0.0  ;;  %v738_v42 = vadd.f32 %v737_v39, %v1529_v33  ;;  %v569_v39 = vadd.f32 %v1510_v3, %v1486_v34 }
 0x17d   :  { %v878_v44 = vpack.c.bf16 %v813_v41, %v812_v40  ;;  %v781_v31 = vmax.f32 %v738_v42, 0.0  ;;  %v832_v36 = vmax.f32 %v569_v39, 0.0 }
 0x17e   :  { %v1533_v45 = vpop.f32.mrf.mxu3 }
 0x17f   :  { %926 = vst [vmem:[#allocation10 + $0x8c] sm:$0xff] %v878_v44  ;;  %v859_v47 = vpack.c.bf16 %v781_v31, %v781_v31  ;;  %v790_v44 = vmax.f32 %v694_v28, 0.0 }
 0x180   :  { %v610_v48 = vpop.f32.mrf.mxu2 }
 0x181   :  { %907 = vst [vmem:[#allocation10 + $0x10] sm:$0xf] %v859_v47  ;;  %v611_v51 = vadd.f32 %v610_v48, %v1490_v35 }
 0x182   :  { %v739_v53 = vpop.f32.mrf.mxu1 }
 0x183   :  { %v818_v55 = vmax.f32 %v611_v51, 0.0  ;;  %v740_v56 = vadd.f32 %v739_v53, %v1529_v33 }
 0x185   :  { %v881_v58 = vpack.c.bf16 %v818_v55, %v817_v54  ;;  %v786_v60 = vmax.f32 %v740_v56, 0.0  ;;  %v696_v54 = vadd.f32 %v1541_v50, %v1538_v49  ;;  %v837_v50 = vmax.f32 %v572_v43, 0.0 }
 0x186   :  { %v639_v61 = vpop.f32.mrf.mxu3 }
 0x187   :  { %929 = vst [vmem:[#allocation10 + $0xa0] sm:$0xff] %v881_v58  ;;  %v862_v63 = vpack.c.bf16 %v786_v60, %v786_v60  ;;  %v640_v0 = vadd.f32 %v639_v61, %v1545_v57  ;;  %v703_v61 = vpop.f32.mrf.mxu0 }
 0x188   :  { %v612_v1 = vpop.f32.mrf.mxu2 }
 0x189   :  { %910 = vst [vmem:[#allocation10 + $0x24] sm:$0xf] %v862_v63  ;;  %v779_v4 = vmax.f32 %v640_v0, 0.0  ;;  %v613_v5 = vadd.f32 %v612_v1, %v1490_v35  ;;  %v795_v63 = vmax.f32 %v696_v54, 0.0 }
 0x18a   :  { %v742_v32 = vpop.f32.mrf.mxu1 }
 0x18b   :  { %v858_v7 = vpack.c.bf16 %v780_v2, %v779_v4  ;;  %v823_v8 = vmax.f32 %v613_v5, 0.0  ;;  %v743_v9 = vadd.f32 %v742_v32, %v1529_v33 }
 0x18d   :  { %906 = vst [vmem:[#allocation10 + $0x8] sm:$0xff] %v858_v7  ;;  %v884_v52 = vpack.c.bf16 %v823_v8, %v822_v6  ;;  %v791_v13 = vmax.f32 %v743_v9, 0.0  ;;  %v699_v6 = vadd.f32 %v698_v10, %v1538_v49  ;;  %v574_v9 = vadd.f32 %v1520_v21, %v1486_v34 }
 0x18e   :  { %v641_v14 = vpop.f32.mrf.mxu3 }
 0x18f   :  { %932 = vst [vmem:[#allocation10 + $0xb4] sm:$0xff] %v884_v52  ;;  %v865_v16 = vpack.c.bf16 %v791_v13, %v791_v13  ;;  %v642_v17 = vadd.f32 %v641_v14, %v1545_v57  ;;  %v800_v14 = vmax.f32 %v699_v6, 0.0  ;;  %v842_v10 = vmax.f32 %v574_v9, 0.0 }
 0x190   :  { %v615_v18 = vpop.f32.mrf.mxu2 }
 0x191   :  { %913 = vst [vmem:[#allocation10 + $0x38] sm:$0xf] %v865_v16  ;;  %v784_v22 = vmax.f32 %v642_v17, 0.0  ;;  %v616_v23 = vadd.f32 %v615_v18, %v1490_v35  ;;  %v705_v17 = vpop.f32.mrf.mxu0 }
 0x192   :  { %v744_v24 = vpop.f32.mrf.mxu1 }
 0x193   :  { %v861_v20 = vpack.c.bf16 %v785_v19, %v784_v22  ;;  %v828_v26 = vmax.f32 %v616_v23, 0.0  ;;  %v745_v27 = vadd.f32 %v744_v24, %v1529_v33  ;;  %v701_v24 = vadd.f32 %v700_v37, %v1538_v49 }
 0x195   :  { %909 = vst [vmem:[#allocation10 + $0x1c] sm:$0xff] %v861_v20  ;;  %v887_v59 = vpack.c.bf16 %v828_v26, %v827_v25  ;;  %v796_v30 = vmax.f32 %v745_v27, 0.0  ;;  %v577_v26 = vadd.f32 %v1525_v29, %v1486_v34 }
 0x196   :  { %v644_v38 = vpop.f32.mrf.mxu3 }
 0x197   :  { %935 = vst [vmem:[#allocation10 + $0xc8] sm:$0xff] %v887_v59  ;;  %v868_v40 = vpack.c.bf16 %v796_v30, %v796_v30  ;;  %v645_v41 = vadd.f32 %v644_v38, %v1545_v57  ;;  %v805_v30 = vmax.f32 %v701_v24, 0.0 }
 0x198   :  { %v617_v42 = vpop.f32.mrf.mxu2 }
 0x199   :  { %916 = vst [vmem:[#allocation10 + $0x4c] sm:$0xf] %v868_v40  ;;  %v789_v31 = vmax.f32 %v645_v41, 0.0  ;;  %v618_v46 = vadd.f32 %v617_v42, %v1490_v35  ;;  %v847_v41 = vmax.f32 %v577_v26, 0.0 }
 0x19a   :  { %v747_v47 = vpop.f32.mrf.mxu1 }
 0x19b   :  { %v864_v48 = vpack.c.bf16 %v790_v44, %v789_v31  ;;  %v833_v51 = vmax.f32 %v618_v46, 0.0  ;;  %v748_v53 = vadd.f32 %v747_v47, %v1529_v33  ;;  %v708_v31 = vpop.f32.mrf.mxu0  ;;  %v704_v46 = vadd.f32 %v703_v61, %v1538_v49 }
 0x19d   :  { %912 = vst [vmem:[#allocation10 + $0x30] sm:$0xff] %v864_v48  ;;  %v890_v3 = vpack.c.bf16 %v833_v51, %v832_v36  ;;  %v801_v55 = vmax.f32 %v748_v53, 0.0  ;;  %v579_v48 = vadd.f32 %v1533_v45, %v1486_v34 }
 0x19e   :  { %v646_v56 = vpop.f32.mrf.mxu3 }
 0x19f   :  { %938 = vst [vmem:[#allocation10 + $0xdc] sm:$0xff] %v890_v3  ;;  %v871_v58 = vpack.c.bf16 %v801_v55, %v801_v55  ;;  %v647_v60 = vadd.f32 %v646_v56, %v1545_v57  ;;  %v810_v3 = vmax.f32 %v704_v46, 0.0 }
 0x1a0   :  { %v620_v62 = vpop.f32.mrf.mxu2 }
 0x1a1   :  { %919 = vst [vmem:[#allocation10 + $0x60] sm:$0xf] %v871_v58  ;;  %v794_v0 = vmax.f32 %v647_v60, 0.0  ;;  %v621_v1 = vadd.f32 %v620_v62, %v1490_v35  ;;  %v852_v58 = vmax.f32 %v579_v48, 0.0 }
 0x1a2   :  { %v749_v2 = vpop.f32.mrf.mxu1 }
 0x1a3   :  { %v867_v4 = vpack.c.bf16 %v795_v63, %v794_v0  ;;  %v838_v5 = vmax.f32 %v621_v1, 0.0  ;;  %v750_v32 = vadd.f32 %v749_v2, %v1529_v33  ;;  %v706_v63 = vadd.f32 %v705_v17, %v1538_v49  ;;  %v710_v0 = vpop.f32.mrf.mxu0 }
 0x1a5   :  { %915 = vst [vmem:[#allocation10 + $0x44] sm:$0xff] %v867_v4  ;;  %v893_v12 = vpack.c.bf16 %v838_v5, %v837_v50  ;;  %v806_v7 = vmax.f32 %v750_v32, 0.0  ;;  %v815_v4 = vmax.f32 %v706_v63, 0.0 }
 0x1a6   :  { %v649_v8 = vpop.f32.mrf.mxu3 }
 0x1a7   :  { %941 = vst [vmem:[#allocation10 + $0xf0] sm:$0xff] %v893_v12  ;;  %v874_v11 = vpack.c.bf16 %v806_v7, %v806_v7  ;;  %v650_v52 = vadd.f32 %v649_v8, %v1545_v57  ;;  %v709_v12 = vadd.f32 %v708_v31, %v1538_v49 }
 0x1a8   :  { %v622_v13 = vpop.f32.mrf.mxu2 }
 0x1a9   :  { %922 = vst [vmem:[#allocation10 + $0x74] sm:$0xf] %v874_v11  ;;  %v799_v15 = vmax.f32 %v650_v52, 0.0  ;;  %v623_v16 = vadd.f32 %v622_v13, %v1490_v35  ;;  %v820_v13 = vmax.f32 %v709_v12, 0.0 }
 0x1aa   :  { %v752_v18 = vpop.f32.mrf.mxu1 }
 0x1ab   :  { %v870_v19 = vpack.c.bf16 %v800_v14, %v799_v15  ;;  %v843_v22 = vmax.f32 %v623_v16, 0.0  ;;  %v753_v23 = vadd.f32 %v752_v18, %v1529_v33  ;;  %v713_v52 = vpop.f32.mrf.mxu0  ;;  %v711_v18 = vadd.f32 %v710_v0, %v1538_v49 }
 0x1ad   :  { %918 = vst [vmem:[#allocation10 + $0x58] sm:$0xff] %v870_v19  ;;  %v896_v21 = vpack.c.bf16 %v843_v22, %v842_v10  ;;  %v811_v25 = vmax.f32 %v753_v23, 0.0  ;;  %v825_v24 = vmax.f32 %v711_v18, 0.0 }
 0x1ae   :  { %v651_v20 = vpop.f32.mrf.mxu3 }
 0x1af   :  { %944 = vst [vmem:[#allocation10 + $0x104] sm:$0xff] %v896_v21  ;;  %v877_v27 = vpack.c.bf16 %v811_v25, %v811_v25  ;;  %v652_v28 = vadd.f32 %v651_v20, %v1545_v57 }
 0x1b0   :  { %v625_v59 = vpop.f32.mrf.mxu2 }
 0x1b1   :  { %925 = vst [vmem:[#allocation10 + $0x88] sm:$0xf] %v877_v27  ;;  %v804_v38 = vmax.f32 %v652_v28, 0.0  ;;  %v626_v39 = vadd.f32 %v625_v59, %v1490_v35  ;;  %v714_v28 = vadd.f32 %v713_v52, %v1538_v49 }
 0x1b2   :  { %v754_v40 = vpop.f32.mrf.mxu1 }
 0x1b3   :  { %v873_v37 = vpack.c.bf16 %v805_v30, %v804_v38  ;;  %v848_v42 = vmax.f32 %v626_v39, 0.0  ;;  %v755_v44 = vadd.f32 %v754_v40, %v1529_v33  ;;  %v715_v25 = vpop.f32.mrf.mxu0  ;;  %v830_v40 = vmax.f32 %v714_v28, 0.0 }
 0x1b4   :  { %v716_v46 = vadd.f32 %v715_v25, %v1538_v49 }
 0x1b5   :  { %921 = vst [vmem:[#allocation10 + $0x6c] sm:$0xff] %v873_v37  ;;  %v899_v29 = vpack.c.bf16 %v848_v42, %v847_v41  ;;  %v816_v47 = vmax.f32 %v755_v44, 0.0 }
 0x1b6   :  { %v654_v36 = vpop.f32.mrf.mxu3 }
 0x1b7   :  { %947 = vst [vmem:[#allocation10 + $0x118] sm:$0xff] %v899_v29  ;;  %v880_v51 = vpack.c.bf16 %v816_v47, %v816_v47  ;;  %v655_v53 = vadd.f32 %v654_v36, %v1545_v57 }
 0x1b8   :  { %v627_v54 = vpop.f32.mrf.mxu2 }
 0x1b9   :  { %928 = vst [vmem:[#allocation10 + $0x9c] sm:$0xf] %v880_v51  ;;  %v809_v55 = vmax.f32 %v655_v53, 0.0  ;;  %v628_v56 = vadd.f32 %v627_v54, %v1490_v35  ;;  %v835_v51 = vmax.f32 %v716_v46, 0.0 }
 0x1ba   :  { %v757_v43 = vpop.f32.mrf.mxu1 }
 0x1bb   :  { %v876_v60 = vpack.c.bf16 %v810_v3, %v809_v55  ;;  %v853_v61 = vmax.f32 %v628_v56, 0.0  ;;  %v758_v62 = vadd.f32 %v757_v43, %v1529_v33  ;;  %v718_v31 = vpop.f32.mrf.mxu0 }
 0x1bc   :  { %v719_v56 = vadd.f32 %v718_v31, %v1538_v49 }
 0x1bd   :  { %924 = vst [vmem:[#allocation10 + $0x80] sm:$0xff] %v876_v60  ;;  %v902_v34 = vpack.c.bf16 %v853_v61, %v852_v58  ;;  %v821_v45 = vmax.f32 %v758_v62, 0.0 }
 0x1be   :  { %v656_v1 = vpop.f32.mrf.mxu3  ;;  %v840_v63 = vmax.f32 %v719_v56, 0.0 }
 0x1bf   :  { %950 = vst [vmem:[#allocation10 + $0x12c] sm:$0xff] %v902_v34  ;;  %v883_v2 = vpack.c.bf16 %v821_v45, %v821_v45  ;;  %v657_v50 = vadd.f32 %v656_v1, %v1545_v57 }
 0x1c1   :  { %931 = vst [vmem:[#allocation10 + $0xb0] sm:$0xf] %v883_v2  ;;  %v814_v35 = vmax.f32 %v657_v50, 0.0 }
 0x1c2   :  { %v759_v5 = vpop.f32.mrf.mxu1 }
 0x1c3   :  { %v879_v32 = vpack.c.bf16 %v815_v4, %v814_v35  ;;  %v760_v6 = vadd.f32 %v759_v5, %v1529_v33  ;;  %v720_v58 = vpop.f32.mrf.mxu0 }
 0x1c4   :  { %v721_v2 = vadd.f32 %v720_v58, %v1538_v49 }
 0x1c5   :  { %927 = vst [vmem:[#allocation10 + $0x94] sm:$0xff] %v879_v32  ;;  %v826_v7 = vmax.f32 %v760_v6, 0.0 }
 0x1c6   :  { %v659_v8 = vpop.f32.mrf.mxu3  ;;  %v845_v6 = vmax.f32 %v721_v2, 0.0 }
 0x1c7   :  { %v886_v9 = vpack.c.bf16 %v826_v7, %v826_v7  ;;  %v660_v11 = vadd.f32 %v659_v8, %v1545_v57 }
 0x1c9   :  { %934 = vst [vmem:[#allocation10 + $0xc4] sm:$0xf] %v886_v9  ;;  %v819_v14 = vmax.f32 %v660_v11, 0.0 }
 0x1ca   :  { %v762_v15 = vpop.f32.mrf.mxu1 }
 0x1cb   :  { %v882_v16 = vpack.c.bf16 %v820_v13, %v819_v14  ;;  %v763_v17 = vadd.f32 %v762_v15, %v1529_v33  ;;  %v723_v32 = vpop.f32.mrf.mxu0 }
 0x1cc   :  { %v724_v11 = vadd.f32 %v723_v32, %v1538_v49 }
 0x1cd   :  { %930 = vst [vmem:[#allocation10 + $0xa8] sm:$0xff] %v882_v16  ;;  %v831_v10 = vmax.f32 %v763_v17, 0.0 }
 0x1ce   :  { %v661_v19 = vpop.f32.mrf.mxu3  ;;  %v850_v16 = vmax.f32 %v724_v11, 0.0 }
 0x1cf   :  { %v889_v22 = vpack.c.bf16 %v831_v10, %v831_v10  ;;  %v662_v23 = vadd.f32 %v661_v19, %v1545_v57 }
 0x1d1   :  { %937 = vst [vmem:[#allocation10 + $0xd8] sm:$0xf] %v889_v22  ;;  %v824_v21 = vmax.f32 %v662_v23, 0.0 }
 0x1d2   :  { %v764_v20 = vpop.f32.mrf.mxu1 }
 0x1d3   :  { %v885_v26 = vpack.c.bf16 %v825_v24, %v824_v21  ;;  %v765_v27 = vadd.f32 %v764_v20, %v1529_v33  ;;  %v725_v18 = vpop.f32.mrf.mxu0 }
 0x1d4   :  { %v726_v19 = vadd.f32 %v725_v18, %v1538_v49 }
 0x1d5   :  { %933 = vst [vmem:[#allocation10 + $0xbc] sm:$0xff] %v885_v26  ;;  %v836_v59 = vmax.f32 %v765_v27, 0.0 }
 0x1d6   :  { %v664_v30 = vpop.f32.mrf.mxu3 }
 0x1d7   :  { %v892_v38 = vpack.c.bf16 %v836_v59, %v836_v59  ;;  %v665_v39 = vadd.f32 %v664_v30, %v1545_v57 }
 0x1d9   :  { %940 = vst [vmem:[#allocation10 + $0xec] sm:$0xf] %v892_v38  ;;  %v829_v41 = vmax.f32 %v665_v39, 0.0 }
 0x1da   :  { %v767_v37 = vpop.f32.mrf.mxu1 }
 0x1db   :  { %v888_v42 = vpack.c.bf16 %v830_v40, %v829_v41  ;;  %v768_v44 = vadd.f32 %v767_v37, %v1529_v33 }
 0x1dd   :  { %936 = vst [vmem:[#allocation10 + $0xd0] sm:$0xff] %v888_v42  ;;  %v841_v29 = vmax.f32 %v768_v44, 0.0 }
 0x1de   :  { %v666_v47 = vpop.f32.mrf.mxu3 }
 0x1df   :  { %v895_v36 = vpack.c.bf16 %v841_v29, %v841_v29  ;;  %v667_v48 = vadd.f32 %v666_v47, %v1545_v57 }
 0x1e1   :  { %943 = vst [vmem:[#allocation10 + $0x100] sm:$0xf] %v895_v36  ;;  %v834_v53 = vmax.f32 %v667_v48, 0.0 }
 0x1e2   :  { %v769_v54 = vpop.f32.mrf.mxu1 }
 0x1e3   :  { %v891_v3 = vpack.c.bf16 %v835_v51, %v834_v53  ;;  %v770_v55 = vadd.f32 %v769_v54, %v1529_v33 }
 0x1e5   :  { %939 = vst [vmem:[#allocation10 + $0xe4] sm:$0xff] %v891_v3  ;;  %v846_v43 = vmax.f32 %v770_v55, 0.0 }
 0x1e6   :  { %v669_v60 = vpop.f32.mrf.mxu3 }
 0x1e7   :  { %v898_v61 = vpack.c.bf16 %v846_v43, %v846_v43  ;;  %v670_v62 = vadd.f32 %v669_v60, %v1545_v57 }
 0x1e9   :  { %946 = vst [vmem:[#allocation10 + $0x114] sm:$0xf] %v898_v61  ;;  %v839_v34 = vmax.f32 %v670_v62, 0.0 }
 0x1ea   :  { %v772_v45 = vpop.f32.mrf.mxu1 }
 0x1eb   :  { %v894_v0 = vpack.c.bf16 %v840_v63, %v839_v34  ;;  %v773_v1 = vadd.f32 %v772_v45, %v1529_v33 }
 0x1ed   :  { %942 = vst [vmem:[#allocation10 + $0xf8] sm:$0xff] %v894_v0  ;;  %v851_v50 = vmax.f32 %v773_v1, 0.0 }
 0x1ee   :  { %v671_v4 = vpop.f32.mrf.mxu3 }
 0x1ef   :  { %v901_v35 = vpack.c.bf16 %v851_v50, %v851_v50  ;;  %v672_v5 = vadd.f32 %v671_v4, %v1545_v57 }
 0x1f1   :  { %949 = vst [vmem:[#allocation10 + $0x128] sm:$0xf] %v901_v35  ;;  %v844_v12 = vmax.f32 %v672_v5, 0.0 }
 0x1f2   :  { %v774_v7 = vpop.f32.mrf.mxu1 }
 0x1f3   :  { %v897_v8 = vpack.c.bf16 %v845_v6, %v844_v12  ;;  %v775_v9 = vadd.f32 %v774_v7, %v1529_v33  ;;  %v855_v33 = vmax.f32 %v726_v19, 0.0 }
 0x1f5   :  { %945 = vst [vmem:[#allocation10 + $0x10c] sm:$0xff] %v897_v8  ;;  %v856_v52 = vmax.f32 %v775_v9, 0.0 }
 0x1f6   :  { %v674_v13 = vpop.f32.mrf.mxu3 }
 0x1f7   :  { %v904_v14 = vpack.c.bf16 %v856_v52, %v856_v52  ;;  %v675_v15 = vadd.f32 %v674_v13, %v1545_v57 }
 0x1f9   :  { %952 = vst [vmem:[#allocation10 + $0x13c] sm:$0xf] %v904_v14  ;;  %v849_v17 = vmax.f32 %v675_v15, 0.0 }
 0x1fb   :  { %v900_v10 = vpack.c.bf16 %v850_v16, %v849_v17 }
 0x1fd   :  { %948 = vst [vmem:[#allocation10 + $0x120] sm:$0xff] %v900_v10 }
 0x1fe   :  { %v676_v22 = vpop.f32.mrf.mxu3 }
 0x1ff   :  { %v677_v23 = vadd.f32 %v676_v22, %v1545_v57 }
 0x201   :  { %v854_v24 = vmax.f32 %v677_v23, 0.0 }
 0x203   :  { %v903_v21 = vpack.c.bf16 %v855_v33, %v854_v24 }
 0x205   :  { %951 = vst [vmem:[#allocation10 + $0x134] sm:$0xff] %v903_v21 }
 0x206   :  { %965 = dma.vmem_to_hbm [thread:$0]  %s958_s3, 5120, %s960_s13, [#allocation4], %s1412_s7, %s1412_s7, %s1413_s8  }
 0x207   :  { %1405 = dma.done.wait [#allocation4], 5120  }
 0x208   :  { %1406 = vsyncadd [#allocation4], 4294962176 }
 0x209   :  { %970 = vsyncpa [#allocation3], 1 }
 0x20a   :  { %971 = vsyncpa [#allocation6], 1 }
 0x20b   :  { %972 = vsyncpa [#allocation9], 1 }
 0x20c   :  { %973 = vsyncpa [#allocation4], 1 }

</bundles_post_ra>
